<compile_context>
chip_gen: v7x
topology: tpu7x:2x2x1
jax: 0.10.0
libtpu: 0.0.40
codegen_flags: <defaults>
</compile_context>

<pallas_src>
import functools

import jax
import jax.numpy as jnp
from jax.experimental import pallas as pl
from jax.experimental.pallas import tpu as pltpu

_LANE = 128
_SUBLANE = 8
_MAX_TILE_ROWS = 2048          # 2048 * 128 * 4B = 1 MiB per f32 input tile.

try:
    _DEVICE_KIND = jax.devices()[0].device_kind.lower()
except Exception:              # pragma: no cover - interpret / odd backends
    _DEVICE_KIND = ""
_IS_V7X = "v7" in _DEVICE_KIND
_NUM_TENSORCORES = 2 if _IS_V7X else 1   # v5e / v6e: single TensorCore.


def _round_up(x, m):
    return ((x + m - 1) // m) * m


def _partial_sums(p, t):
    """Per-element [un-negated BCE, p*t, p+t] terms (f32).

    The -100 clamp (PyTorch BCELoss convention) is applied *before* the
    multiply by t, so masked (p, t) == (0, 0) rows contribute exactly 0.
    """
    log_p = jnp.maximum(jnp.log(p), -100.0)
    log_1mp = jnp.maximum(jnp.log(1.0 - p), -100.0)
    bce_unneg = log_1mp + t * (log_p - log_1mp)   # == -(per-element BCE)
    return bce_unneg, p * t, p + t


def _loss_sums_kernel(p_ref, t_ref, out_ref, *, tile_rows, total_rows,
                      inner_steps, exact):
    """Accumulates per-core partials [bce_unneg, p*t, p+t] as (8,128) vregs."""
    i = pl.program_id(0)       # "parallel" (megacore) axis
    j = pl.program_id(1)       # sequential reduction axis

    @pl.when(j == 0)
    def _():
        out_ref[...] = jnp.zeros_like(out_ref)

    def accumulate(p, t):
        bce, pt, ps = _partial_sums(p, t)

        def part(x):
            # (tile_rows, 128) -> (8, 128): vreg-wise VPU adds only (no XLU).
            return jnp.sum(
                x.reshape(tile_rows // _SUBLANE, _SUBLANE, _LANE), axis=0)

        out_ref[0, :, :] += part(bce)
        out_ref[1, :, :] += part(pt)
        out_ref[2, :, :] += part(ps)

    if exact:
        # Every block is full and every grid step owns a distinct block:
        # single unconditional fast path, no masking anywhere.
        accumulate(p_ref[...].astype(jnp.float32),
                   t_ref[...].astype(jnp.float32))
    else:
        block_idx = i * inner_steps + j
        row_start = block_idx * tile_rows
        is_full = row_start + tile_rows <= total_rows
        is_partial = jnp.logical_and(jnp.logical_not(is_full),
                                     row_start < total_rows)

        @pl.when(is_full)
        def _():
            accumulate(p_ref[...].astype(jnp.float32),
                       t_ref[...].astype(jnp.float32))

        @pl.when(is_partial)
        def _():
            # Ragged tail block: zero rows past the real data *before* the
            # logs so out-of-range garbage never reaches them.
            row_ids = row_start + jax.lax.broadcasted_iota(
                jnp.int32, (tile_rows, 1), 0)
            mask = row_ids < total_rows
            accumulate(jnp.where(mask, p_ref[...].astype(jnp.float32), 0.0),
                       jnp.where(mask, t_ref[...].astype(jnp.float32), 0.0))
        # Fully out-of-range (clamped duplicate) blocks match neither branch
        # and contribute nothing (only their DMA is wasted, and only in the
        # rare non-exact-cover case).


def _scalar_epilogue(sum_bce_unneg, numerator, denominator, n_elems):
    smoothing = jnp.float32(1e-09)
    loss_bce = -sum_bce_unneg / jnp.float32(n_elems)  # BCELoss(reduction='mean')
    jaccard = numerator / (denominator - numerator + smoothing)
    dice = 2.0 * (numerator / (denominator + smoothing))
    return loss_bce + (1.0 - dice) + (1.0 - jaccard)


@jax.jit
def dice_bce_loss(y_pred, y_truth):
    assert y_pred.shape == y_truth.shape
    n_elems = y_pred.size

    p_flat = y_pred.reshape(-1)
    t_flat = y_truth.reshape(-1)

    rows = n_elems // _LANE
    tail = n_elems - rows * _LANE

    if rows == 0:
        # Tiny input: a kernel launch is not worth it.
        bce, pt, ps = _partial_sums(p_flat.astype(jnp.float32),
                                    t_flat.astype(jnp.float32))
        return _scalar_epilogue(jnp.sum(bce), jnp.sum(pt), jnp.sum(ps),
                                n_elems)

    # 128-lane-aligned prefix goes through the kernel.  Common case
    # (n_elems % 128 == 0): pure reshape, zero HBM copies.
    # TODO(synk): for unaligned sizes the prefix slice still copies; a
    # memory_space=pl.ANY manual-DMA path would remove that copy as well.
    if tail:
        p2d = p_flat[: rows * _LANE].reshape(rows, _LANE)
        t2d = t_flat[: rows * _LANE].reshape(rows, _LANE)
    else:
        p2d = p_flat.reshape(rows, _LANE)
        t2d = t_flat.reshape(rows, _LANE)

    tile_rows = min(_MAX_TILE_ROWS, _round_up(rows, _SUBLANE))
    num_blocks = pl.cdiv(rows, tile_rows)

    p_par = _NUM_TENSORCORES if num_blocks >= _NUM_TENSORCORES else 1
    if p_par > 1 and num_blocks % p_par != 0:
        # Re-pick tile_rows so the 2-way TensorCore split is exact (no clamped
        # duplicate block, no wasted DMA).
        target_blocks = _round_up(num_blocks, p_par)
        tile_rows = min(_MAX_TILE_ROWS,
                        _round_up(pl.cdiv(rows, target_blocks), _SUBLANE))
        num_blocks = pl.cdiv(rows, tile_rows)

    k_inner = pl.cdiv(num_blocks, p_par)
    exact_cover = (p_par * k_inner == num_blocks)
    exact = exact_cover and (num_blocks * tile_rows == rows)

    if exact_cover:
        in_idx = lambda i, j: (i * k_inner + j, 0)
    else:
        # Rare leftover grid step: clamp its block index; the kernel skips its
        # compute entirely.
        in_idx = lambda i, j: (jnp.minimum(i * k_inner + j, num_blocks - 1), 0)

    in_spec_kwargs = {}
    if _IS_V7X:
        # Deeper buffering hides per-step DMA turnaround at 3.2 TB/s HBM.
        in_spec_kwargs["pipeline_mode"] = pl.Buffered(3)
    in_specs = [pl.BlockSpec((tile_rows, _LANE), in_idx, **in_spec_kwargs),
                pl.BlockSpec((tile_rows, _LANE), in_idx, **in_spec_kwargs)]

    kernel = functools.partial(
        _loss_sums_kernel,
        tile_rows=tile_rows,
        total_rows=rows,
        inner_steps=k_inner,
        exact=exact,
    )

    n_kernel = rows * _LANE
    in_bytes = (p2d.size * p2d.dtype.itemsize +
                t2d.size * t2d.dtype.itemsize)
    cost = pl.CostEstimate(
        flops=12 * n_kernel,
        transcendentals=2 * n_kernel,
        bytes_accessed=in_bytes + p_par * 3 * _SUBLANE * _LANE * 4,
    )

    partials = pl.pallas_call(
        kernel,
        out_shape=jax.ShapeDtypeStruct((p_par, 3, _SUBLANE, _LANE),
                                       jnp.float32),
        grid_spec=pltpu.PrefetchScalarGridSpec(
            num_scalar_prefetch=0,
            grid=(p_par, k_inner),
            in_specs=in_specs,
            out_specs=pl.BlockSpec((None, 3, _SUBLANE, _LANE),
                                   lambda i, j: (i, 0, 0, 0)),
        ),
        compiler_params=pltpu.CompilerParams(
            dimension_semantics=("parallel", "arbitrary"),
        ),
        cost_estimate=cost,
    )(p2d, t2d)

    # Tiny final reduction (p_par * 3 * 1024 floats) in plain JAX.
    sums = jnp.sum(partials, axis=(0, 2, 3))
    sum_bce_unneg, numerator, denominator = sums[0], sums[1], sums[2]

    if tail:
        # Sub-128-element tail: reduce with plain JAX (at most 127 elements).
        p_tail = p_flat[rows * _LANE:].astype(jnp.float32)
        t_tail = t_flat[rows * _LANE:].astype(jnp.float32)
        bce_t, pt_t, ps_t = _partial_sums(p_tail, t_tail)
        sum_bce_unneg = sum_bce_unneg + jnp.sum(bce_t)
        numerator = numerator + jnp.sum(pt_t)
        denominator = denominator + jnp.sum(ps_t)

    return _scalar_epilogue(sum_bce_unneg, numerator, denominator, n_elems)


def _reference(y_pred, y_truth):
    p = y_pred.reshape(-1).astype(jnp.float32)
    t = y_truth.reshape(-1).astype(jnp.float32)
    log_p = jnp.maximum(jnp.log(p), -100.0)
    log_1mp = jnp.maximum(jnp.log(1.0 - p), -100.0)
    bce = jnp.mean(-(t * log_p + (1.0 - t) * log_1mp))
    num = jnp.sum(p * t)
    den = jnp.sum(p) + jnp.sum(t)
    jac = num / (den - num + 1e-09)
    dice = 2.0 * num / (den + 1e-09)
    return bce + (1.0 - dice) + (1.0 - jac)


if __name__ == "__main__":
    key = jax.random.PRNGKey(0)
    k1, k2 = jax.random.split(key)
    # NCHW inputs as a segmentation head would produce: batch=2, ch=4, 16x16.
    y_pred = jax.nn.sigmoid(
        jax.random.normal(k1, (2, 4, 16, 16), dtype=jnp.float32))
    y_truth = (jax.random.uniform(k2, (2, 4, 16, 16)) > 0.5).astype(
        jnp.float32)

    loss = jax.block_until_ready(dice_bce_loss(y_pred, y_truth))

    ref = _reference(y_pred, y_truth)
    assert jnp.allclose(loss, ref, rtol=1e-5, atol=1e-5), (loss, ref)
    print("KERNEL_OK")
</pallas_src>

<mosaic_0001>
module attributes {stable_mosaic.version = 11 : i64} {
  func.func @_loss_sums_kernel(%arg0: i32, %arg1: i32, %arg2: memref<16x128xf32, #tpu.memory_space<vmem>>, %arg3: memref<16x128xf32, #tpu.memory_space<vmem>>, %arg4: memref<1x3x8x128xf32, #tpu.memory_space<vmem>>) attributes {dimension_semantics = [#tpu.dimension_semantics<parallel>, #tpu.dimension_semantics<arbitrary>], iteration_bounds = array<i64: 1, 1>, scalar_prefetch = 0 : i64, scratch_operands = 0 : i64, tpu.core_type = #tpu.core_type<tc>, window_params = [{transform_indices = @transform_0, window_bounds = array<i64: 16, 128>}, {transform_indices = @transform_1, window_bounds = array<i64: 16, 128>}, {transform_indices = @transform_2, window_bounds = array<i64: 1, 3, 8, 128>}]} {
    %c0_i32 = arith.constant 0 : i32
    %0 = arith.cmpi eq, %arg1, %c0_i32 : i32
    %1 = arith.extui %0 : i1 to i32
    %c0_i32_0 = arith.constant 0 : i32
    %2 = arith.cmpi ne, %1, %c0_i32_0 : i32
    scf.if %2 {
      %cst_31 = arith.constant 0.000000e+00 : f32
      %42 = vector.broadcast %cst_31 : f32 to vector<3x8x128xf32>
      %c0_32 = arith.constant 0 : index
      %c0_33 = arith.constant 0 : index
      %c0_34 = arith.constant 0 : index
      %c0_35 = arith.constant 0 : index
      %43 = vector.load %arg4[%c0_32, %c0_33, %c0_34, %c0_35] : memref<1x3x8x128xf32, #tpu.memory_space<vmem>>, vector<1x3x8x128xf32>
      %44 = vector.shape_cast %43 : vector<1x3x8x128xf32> to vector<3x8x128xf32>
      %45 = vector.shape_cast %42 : vector<3x8x128xf32> to vector<1x3x8x128xf32>
      tpu.vector_store %arg4[%c0_32, %c0_33, %c0_34, %c0_35], %45 {strides = array<i32>} : memref<1x3x8x128xf32, #tpu.memory_space<vmem>>, vector<1x3x8x128xf32>,
    } else {
    }
    %c0 = arith.constant 0 : index
    %c0_1 = arith.constant 0 : index
    %3 = vector.load %arg2[%c0, %c0_1] : memref<16x128xf32, #tpu.memory_space<vmem>>, vector<16x128xf32>
    %c0_2 = arith.constant 0 : index
    %c0_3 = arith.constant 0 : index
    %4 = vector.load %arg3[%c0_2, %c0_3] : memref<16x128xf32, #tpu.memory_space<vmem>>, vector<16x128xf32>
    %5 = math.log %3 : vector<16x128xf32>
    %cst = arith.constant -1.000000e+02 : f32
    %6 = vector.broadcast %cst : f32 to vector<16x128xf32>
    %7 = arith.maximumf %5, %6 : vector<16x128xf32>
    %cst_4 = arith.constant 1.000000e+00 : f32
    %8 = vector.broadcast %cst_4 : f32 to vector<16x128xf32>
    %9 = arith.subf %8, %3 : vector<16x128xf32>
    %10 = math.log %9 : vector<16x128xf32>
    %cst_5 = arith.constant -1.000000e+02 : f32
    %11 = vector.broadcast %cst_5 : f32 to vector<16x128xf32>
    %12 = arith.maximumf %10, %11 : vector<16x128xf32>
    %13 = arith.subf %7, %12 : vector<16x128xf32>
    %14 = arith.mulf %4, %13 : vector<16x128xf32>
    %15 = arith.addf %12, %14 : vector<16x128xf32>
    %16 = arith.mulf %3, %4 : vector<16x128xf32>
    %17 = arith.addf %3, %4 : vector<16x128xf32>
    %c0_6 = arith.constant 0 : index
    %c0_7 = arith.constant 0 : index
    %c0_8 = arith.constant 0 : index
    %c0_9 = arith.constant 0 : index
    %18 = vector.load %arg4[%c0_6, %c0_7, %c0_8, %c0_9] : memref<1x3x8x128xf32, #tpu.memory_space<vmem>>, vector<1x1x8x128xf32>
    %19 = vector.shape_cast %18 : vector<1x1x8x128xf32> to vector<8x128xf32>
    %20 = vector.shape_cast %15 : vector<16x128xf32> to vector<2x8x128xf32>
    %cst_10 = arith.constant dense<0.000000e+00> : vector<8x128xf32>
    %21 = vector.multi_reduction <add>, %20, %cst_10 [0] : vector<2x8x128xf32> to vector<8x128xf32>
    %22 = arith.addf %19, %21 : vector<8x128xf32>
    %c0_11 = arith.constant 0 : index
    %c0_12 = arith.constant 0 : index
    %c0_13 = arith.constant 0 : index
    %c0_14 = arith.constant 0 : index
    %23 = vector.load %arg4[%c0_11, %c0_12, %c0_13, %c0_14] : memref<1x3x8x128xf32, #tpu.memory_space<vmem>>, vector<1x1x8x128xf32>
    %24 = vector.shape_cast %23 : vector<1x1x8x128xf32> to vector<8x128xf32>
    %25 = vector.shape_cast %22 : vector<8x128xf32> to vector<1x1x8x128xf32>
    tpu.vector_store %arg4[%c0_11, %c0_12, %c0_13, %c0_14], %25 {strides = array<i32>} : memref<1x3x8x128xf32, #tpu.memory_space<vmem>>, vector<1x1x8x128xf32>,
    %c0_15 = arith.constant 0 : index
    %c1 = arith.constant 1 : index
    %c0_16 = arith.constant 0 : index
    %c0_17 = arith.constant 0 : index
    %26 = vector.load %arg4[%c0_15, %c1, %c0_16, %c0_17] : memref<1x3x8x128xf32, #tpu.memory_space<vmem>>, vector<1x1x8x128xf32>
    %27 = vector.shape_cast %26 : vector<1x1x8x128xf32> to vector<8x128xf32>
    %28 = vector.shape_cast %16 : vector<16x128xf32> to vector<2x8x128xf32>
    %cst_18 = arith.constant dense<0.000000e+00> : vector<8x128xf32>
    %29 = vector.multi_reduction <add>, %28, %cst_18 [0] : vector<2x8x128xf32> to vector<8x128xf32>
    %30 = arith.addf %27, %29 : vector<8x128xf32>
    %c0_19 = arith.constant 0 : index
    %c1_20 = arith.constant 1 : index
    %c0_21 = arith.constant 0 : index
    %c0_22 = arith.constant 0 : index
    %31 = vector.load %arg4[%c0_19, %c1_20, %c0_21, %c0_22] : memref<1x3x8x128xf32, #tpu.memory_space<vmem>>, vector<1x1x8x128xf32>
    %32 = vector.shape_cast %31 : vector<1x1x8x128xf32> to vector<8x128xf32>
    %33 = vector.shape_cast %30 : vector<8x128xf32> to vector<1x1x8x128xf32>
    tpu.vector_store %arg4[%c0_19, %c1_20, %c0_21, %c0_22], %33 {strides = array<i32>} : memref<1x3x8x128xf32, #tpu.memory_space<vmem>>, vector<1x1x8x128xf32>,
    %c0_23 = arith.constant 0 : index
    %c2 = arith.constant 2 : index
    %c0_24 = arith.constant 0 : index
    %c0_25 = arith.constant 0 : index
    %34 = vector.load %arg4[%c0_23, %c2, %c0_24, %c0_25] : memref<1x3x8x128xf32, #tpu.memory_space<vmem>>, vector<1x1x8x128xf32>
    %35 = vector.shape_cast %34 : vector<1x1x8x128xf32> to vector<8x128xf32>
    %36 = vector.shape_cast %17 : vector<16x128xf32> to vector<2x8x128xf32>
    %cst_26 = arith.constant dense<0.000000e+00> : vector<8x128xf32>
    %37 = vector.multi_reduction <add>, %36, %cst_26 [0] : vector<2x8x128xf32> to vector<8x128xf32>
    %38 = arith.addf %35, %37 : vector<8x128xf32>
    %c0_27 = arith.constant 0 : index
    %c2_28 = arith.constant 2 : index
    %c0_29 = arith.constant 0 : index
    %c0_30 = arith.constant 0 : index
    %39 = vector.load %arg4[%c0_27, %c2_28, %c0_29, %c0_30] : memref<1x3x8x128xf32, #tpu.memory_space<vmem>>, vector<1x1x8x128xf32>
    %40 = vector.shape_cast %39 : vector<1x1x8x128xf32> to vector<8x128xf32>
    %41 = vector.shape_cast %38 : vector<8x128xf32> to vector<1x1x8x128xf32>
    tpu.vector_store %arg4[%c0_27, %c2_28, %c0_29, %c0_30], %41 {strides = array<i32>} : memref<1x3x8x128xf32, #tpu.memory_space<vmem>>, vector<1x1x8x128xf32>,
    return
  }
  func.func @transform_0(%arg0: i32, %arg1: i32) -> (i32, i32) {
    %c1_i32 = arith.constant 1 : i32
    %0 = arith.muli %arg0, %c1_i32 : i32
    %1 = arith.addi %0, %arg1 : i32
    %c0_i32 = arith.constant 0 : i32
    %c0_i32_0 = arith.constant 0 : i32
    return %1, %c0_i32 : i32, i32
  }
  func.func @transform_1(%arg0: i32, %arg1: i32) -> (i32, i32) {
    %c1_i32 = arith.constant 1 : i32
    %0 = arith.muli %arg0, %c1_i32 : i32
    %1 = arith.addi %0, %arg1 : i32
    %c0_i32 = arith.constant 0 : i32
    %c0_i32_0 = arith.constant 0 : i32
    return %1, %c0_i32 : i32, i32
  }
  func.func @transform_2(%arg0: i32, %arg1: i32) -> (i32, i32, i32, i32) {
    %c0_i32 = arith.constant 0 : i32
    %c0_i32_0 = arith.constant 0 : i32
    %c0_i32_1 = arith.constant 0 : i32
    %c0_i32_2 = arith.constant 0 : i32
    return %arg0, %c0_i32, %c0_i32_0, %c0_i32_1 : i32, i32, i32, i32
  }
}

</mosaic_0001>

<bundles_post_ra>
// kernel: dice_bce_loss.1
= control target key start
LH: loop header
LB: loop body
LE: loop exit
PB: predicated region body
PF: predicated region fallthrough
CT: control target
= control target key end

     0   :  { %s169_s0 = inlined_call_operand.vmem [shape: f32[16,128], index: 0, kind: input, shape index: {}]   ;;  %s170_s1 = inlined_call_operand.vmem [shape: f32[16,128], index: 1, kind: input, shape index: {}]   ;;  %s171_s2 = inlined_call_operand.vmem [shape: f32[1,3,8,128], index: 2, kind: output, shape index: {}]  }
   0x1   :  { %v62_v0 = vld [vmem:[%s169_s0] sm:$0xff]  ;;  %v63_v1 = vld [vmem:[%s169_s0 + $0x8] sm:$0xff] }
   0x2   :  { %v64_v2 = vld [vmem:[%s170_s1] sm:$0xff]  ;;  %v65_v3 = vld [vmem:[%s170_s1 + $0x8] sm:$0xff]  ;;  %125 = vlog2.f32 %v62_v0  ;;  %v72_v4 = vsub.f32 1.0, %v62_v0  ;;  %v73_v5 = vsub.f32 1.0, %v63_v1 }
   0x3   :  { %v86_v6 = vmul.f32 %v64_v2, %v62_v0  ;;  %127 = vlog2.f32 %v63_v1  ;;  %v87_v7 = vmul.f32 %v65_v3, %v63_v1  ;;  %v88_v8 = vadd.f32 %v64_v2, %v62_v0 }
   0x4   :  { %v89_v9 = vadd.f32 %v65_v3, %v63_v1  ;;  %129 = vlog2.f32 %v72_v4 }
   0x5   :  { %131 = vlog2.f32 %v73_v5  ;;  %v96_v10 = vadd.f32 %v87_v7, %v86_v6 }
   0x6   :  { %v101_v11 = vadd.f32 %v89_v9, %v88_v8 }
   0x7   :  { %121 = vst [vmem:[%s171_s2 + $0x8] sm:$0xff] %v96_v10 }
   0x8   :  { %123 = vst [vmem:[%s171_s2 + $0x10] sm:$0xff] %v101_v11 }
   0xc   :  { %v126_v12 = vpop.eup %125 }
   0xd   :  { %v128_v13 = vpop.eup %127  ;;  %v67_v14 = vmul.f32 0.6931472, %v126_v12 }
   0xe   :  { %v130_v15 = vpop.eup %129  ;;  %v69_v16 = vmul.f32 0.6931472, %v128_v13 }
   0xf   :  { %v132_v17 = vpop.eup %131  ;;  %v70_v18 = vmax.f32 %v67_v14, -100.0  ;;  %v75_v19 = vmul.f32 0.6931472, %v130_v15 }
  0x10   :  { %v71_v20 = vmax.f32 %v69_v16, -100.0  ;;  %v77_v21 = vmul.f32 0.6931472, %v132_v17 }
  0x11   :  { %v78_v22 = vmax.f32 %v75_v19, -100.0 }
  0x12   :  { %v79_v23 = vmax.f32 %v77_v21, -100.0 }
  0x13   :  { %v80_v24 = vsub.f32 %v70_v18, %v78_v22 }
  0x14   :  { %v81_v25 = vsub.f32 %v71_v20, %v79_v23 }
  0x15   :  { %v82_v26 = vmul.f32 %v80_v24, %v64_v2 }
  0x16   :  { %v83_v27 = vmul.f32 %v81_v25, %v65_v3 }
  0x17   :  { %v84_v28 = vadd.f32 %v82_v26, %v78_v22 }
  0x18   :  { %v85_v29 = vadd.f32 %v83_v27, %v79_v23 }
  0x1a   :  { %v91_v30 = vadd.f32 %v85_v29, %v84_v28 }
  0x1c   :  { %93 = vst [vmem:[%s171_s2] sm:$0xff] %v91_v30 }

</bundles_post_ra>
